<compile_context>
chip_gen: v6e
topology: v6e:2x2x1
jax: 0.10.0
libtpu: 0.0.40
codegen_flags: <defaults>
</compile_context>

<pallas_src>
import jax
import jax.numpy as jnp
from jax.experimental import pallas as pl
from jax.experimental.pallas import tpu as pltpu


# --------------------------------------------------------------------------
# Kernel
# --------------------------------------------------------------------------
def _mlp_kernel(x_ref, w1_ref, b1_ref, w2_ref, b2_ref, o_ref, acc_ref):
    """One (batch-tile, hidden-chunk) grid step.

    x_ref : (TM, D_in)      native dtype (cast to weight dtype in-kernel)
    w1_ref: (D_in, TK)      compute dtype (bf16)
    b1_ref: (1, TK)         f32
    w2_ref: (TK, D_out_p)   compute dtype (bf16)
    b2_ref: (1, D_out_p)    f32
    o_ref : (TM, D_out_p)   out dtype
    acc_ref: (TM, D_out_p)  f32 scratch, resident across the hidden-chunk axis
    """
    k = pl.program_id(1)

    @pl.when(k == 0)
    def _init():
        acc_ref[...] = jnp.zeros_like(acc_ref)

    # Hidden-layer chunk: (TM, D_in) @ (D_in, TK) -> f32.
    xb = x_ref[...].astype(w1_ref.dtype)          # VPU cast, hides under dots
    h = jnp.dot(xb, w1_ref[...], preferred_element_type=jnp.float32)
    h = jnp.maximum(h + b1_ref[...], 0.0)         # bias + ReLU in f32

    # Output-layer partial: (TM, TK) @ (TK, D_out_p), f32 accumulation.
    acc_ref[...] += jnp.dot(h.astype(w2_ref.dtype), w2_ref[...],
                            preferred_element_type=jnp.float32)

    @pl.when(k == pl.num_programs(1) - 1)
    def _finalize():
        o_ref[...] = (acc_ref[...] + b2_ref[...]).astype(o_ref.dtype)


# --------------------------------------------------------------------------
# Helpers
# --------------------------------------------------------------------------
def _round_up(n, m):
    return -(-n // m) * m


def _pad2d(a, rows, cols):
    pr = rows - a.shape[0]
    pc = cols - a.shape[1]
    if pr or pc:
        a = jnp.pad(a, ((0, pr), (0, pc)))
    return a


def _block_spec(shape, index_map, n_buffers=None):
    """BlockSpec with optional explicit buffer count (graceful fallback)."""
    if n_buffers is not None and hasattr(pl, "Buffered"):
        try:
            return pl.BlockSpec(shape, index_map,
                                pipeline_mode=pl.Buffered(n_buffers))
        except TypeError:
            pass
    return pl.BlockSpec(shape, index_map)


def _vmem_capacity_bytes():
    try:
        return int(pltpu.get_tpu_info().vmem_capacity_bytes)
    except Exception:
        return 64 * 1024 * 1024  # conservative: v7x per-TC physical VMEM


# --------------------------------------------------------------------------
# Wrapper
# --------------------------------------------------------------------------
def mlp_forward(x, w1, b1, w2, b2, *, compute_dtype=jnp.bfloat16,
                out_dtype=jnp.float32, block_rows=None, hidden_chunk=None):
    """Fused MLP forward: ReLU(x @ W1 + b1) @ W2 + b2.

    x : [B, D_in] (any float dtype; cast to `compute_dtype` in-kernel)
    w1: [D_in, H],  b1: [H]
    w2: [H, D_out], b2: [D_out]
    returns [B, D_out] in `out_dtype` (default f32; bf16 halves writeback).
    """
    B, d_in = x.shape
    h_dim = w1.shape[1]
    d_out = w2.shape[1]

    d_out_p = _round_up(d_out, 128)

    # ---- hidden-dim chunking (bounds live f32 slab / streamed weights) ----
    if hidden_chunk is None:
        # Single chunk for small H; 512-deep (multiple of 256, fills the
        # v6e/v7x 2x256^2 MXU) chunks for large H.
        hidden_chunk = 512 if h_dim > 1024 else _round_up(h_dim, 128)
    tk = _round_up(hidden_chunk, 128)
    h_p = _round_up(h_dim, tk)
    num_k = h_p // tk

    # ---- batch tiling: sublane-aligned rows; >= 2 steps for megacore ------
    if block_rows is None:
        block_rows = min(512, _round_up(max(-(-B // 2), 8), 16))
    tm = _round_up(max(block_rows, 8), 16)
    b_pad = _round_up(B, tm)
    num_b = b_pad // tm

    # ---- one-time weight/bias prep (reused across forwards) ---------------
    w1_p = _pad2d(w1, d_in, h_p).astype(compute_dtype)
    w2_p = _pad2d(w2, h_p, d_out_p).astype(compute_dtype)
    b1_p = _pad2d(b1.astype(jnp.float32).reshape(1, -1), 1, h_p)
    b2_p = _pad2d(b2.astype(jnp.float32).reshape(1, -1), 1, d_out_p)
    # Activations: native dtype, feature dim unpadded; batch pad only if
    # needed (zero rows are sliced off the output).
    x_p = _pad2d(x, b_pad, d_in)

    # Buffer counts: constant-index blocks single-buffer, streamed blocks
    # double-buffer.  (Raise the x buffering to 3 if profiling shows the
    # activation DMA exposed for thin-d_in shapes.)
    w_bufs = 1 if num_k == 1 else 2
    x_bufs = 2 if num_b > 1 else 1

    # ---- derived VMEM limit ------------------------------------------------
    f32b = 4
    cdb = jnp.dtype(compute_dtype).itemsize
    xib = jnp.dtype(x_p.dtype).itemsize
    oib = jnp.dtype(out_dtype).itemsize
    footprint = (
        x_bufs * tm * d_in * xib                       # activation buffers
        + w_bufs * (d_in * tk + tk * d_out_p) * cdb    # weight chunk buffers
        + 2 * (tk + d_out_p) * f32b                    # bias buffers
        + tm * d_out_p * f32b                          # f32 accumulator scratch
        + 2 * tm * d_out_p * oib                       # output buffers
        + tm * tk * (f32b + cdb)                       # live hidden slab + cast
    )
    vmem_cap = _vmem_capacity_bytes()
    vmem_limit = int(min(vmem_cap * 0.9,
                         max(2 * footprint + (8 << 20), 32 << 20)))

    cost = pl.CostEstimate(
        flops=2 * b_pad * (d_in * h_p + h_p * d_out_p),
        transcendentals=0,
        bytes_accessed=(x_p.size * xib
                        + (w1_p.size + w2_p.size) * cdb
                        + (b1_p.size + b2_p.size) * f32b
                        + b_pad * d_out_p * oib),
    )

    out_padded = pl.pallas_call(
        _mlp_kernel,
        out_shape=jax.ShapeDtypeStruct((b_pad, d_out_p), out_dtype),
        grid=(num_b, num_k),
        in_specs=[
            # Activations: tiled over the batch axis, constant over H chunks
            # (Pallas skips the re-DMA when the block index is unchanged).
            _block_spec((tm, d_in), lambda i, k: (i, 0), x_bufs),
            # W1 / b1: stream H chunks.
            _block_spec((d_in, tk), lambda i, k: (0, k), w_bufs),
            _block_spec((1, tk), lambda i, k: (0, k), w_bufs),
            # W2: stream H chunks (rows).
            _block_spec((tk, d_out_p), lambda i, k: (k, 0), w_bufs),
            # b2: constant -> single buffer.
            _block_spec((1, d_out_p), lambda i, k: (0, 0), 1),
        ],
        out_specs=pl.BlockSpec((tm, d_out_p), lambda i, k: (i, 0)),
        scratch_shapes=[pltpu.VMEM((tm, d_out_p), jnp.float32)],
        compiler_params=pltpu.CompilerParams(
            dimension_semantics=("parallel", "arbitrary"),
            vmem_limit_bytes=vmem_limit,
        ),
        cost_estimate=cost,
    )(x_p, w1_p, b1_p, w2_p, b2_p)

    return out_padded[:B, :d_out]


def mlp_predict(x, w1, b1, w2, b2):
    """Mirrors MLP.predict: argmax over the output classes."""
    logits = mlp_forward(x.astype(jnp.float32), w1, b1, w2, b2)
    return jnp.argmax(logits, axis=1)


def init_mlp_params(key, input_dim, hidden_dim, output_dim):
    """Deterministic init matching nn.Linear (weights stored as [in, out])."""
    k1, k2, k3, k4 = jax.random.split(key, 4)
    bound1 = 1.0 / jnp.sqrt(input_dim)
    bound2 = 1.0 / jnp.sqrt(hidden_dim)
    w1 = jax.random.uniform(k1, (input_dim, hidden_dim), jnp.float32,
                            -bound1, bound1)
    b1 = jax.random.uniform(k2, (hidden_dim,), jnp.float32, -bound1, bound1)
    w2 = jax.random.uniform(k3, (hidden_dim, output_dim), jnp.float32,
                            -bound2, bound2)
    b2 = jax.random.uniform(k4, (output_dim,), jnp.float32, -bound2, bound2)
    return w1, b1, w2, b2


if __name__ == "__main__":
    key = jax.random.PRNGKey(0)
    kx, kp = jax.random.split(key)

    batch = 8
    input_dim = 32
    hidden_dim = 64
    output_dim = 16

    x = jax.random.normal(kx, (batch, input_dim), jnp.float32)
    w1, b1, w2, b2 = init_mlp_params(kp, input_dim, hidden_dim, output_dim)

    out = mlp_forward(x, w1, b1, w2, b2)
    out = jax.block_until_ready(out)
    assert out.shape == (batch, output_dim)
    assert out.dtype == jnp.float32

    # Reference mimicking the kernel's mixed precision (bf16 operands,
    # f32 accumulation, bf16 re-cast of the hidden activations).
    xr = x.astype(jnp.bfloat16).astype(jnp.float32)
    w1r = w1.astype(jnp.bfloat16).astype(jnp.float32)
    w2r = w2.astype(jnp.bfloat16).astype(jnp.float32)
    h_ref = jnp.maximum(xr @ w1r + b1, 0.0)
    h_ref = h_ref.astype(jnp.bfloat16).astype(jnp.float32)
    ref = h_ref @ w2r + b2
    assert jnp.allclose(out, ref, atol=2e-2, rtol=2e-2)

    # Sanity check against the pure-f32 math of the PyTorch module.
    ref_f32 = jnp.maximum(x @ w1 + b1, 0.0) @ w2 + b2
    assert jnp.allclose(out, ref_f32, atol=5e-2, rtol=5e-2)

    # predict() parity (argmax over classes).
    preds = jax.block_until_ready(mlp_predict(x, w1, b1, w2, b2))
    assert preds.shape == (batch,)
    assert jnp.array_equal(preds, jnp.argmax(ref_f32, axis=1))

    print("KERNEL_OK")
</pallas_src>

<mosaic_0001>
module attributes {stable_mosaic.version = 11 : i64} {
  func.func @_mlp_kernel(%arg0: i32, %arg1: i32, %arg2: memref<16x32xf32, #tpu.memory_space<vmem>>, %arg3: memref<32x128xbf16, #tpu.memory_space<vmem>>, %arg4: memref<1x128xf32, #tpu.memory_space<vmem>>, %arg5: memref<128x128xbf16, #tpu.memory_space<vmem>>, %arg6: memref<1x128xf32, #tpu.memory_space<vmem>>, %arg7: memref<16x128xf32, #tpu.memory_space<vmem>>, %arg8: memref<16x128xf32, #tpu.memory_space<vmem>>) attributes {dimension_semantics = [#tpu.dimension_semantics<parallel>, #tpu.dimension_semantics<arbitrary>], iteration_bounds = array<i64: 1, 1>, scalar_prefetch = 0 : i64, scratch_operands = 1 : i64, tpu.core_type = #tpu.core_type<tc>, window_params = [{pipeline_mode = #tpu.pipeline_mode<synchronous>, transform_indices = @transform_0, window_bounds = array<i64: 16, 32>}, {pipeline_mode = #tpu.pipeline_mode<synchronous>, transform_indices = @transform_1, window_bounds = array<i64: 32, 128>}, {pipeline_mode = #tpu.pipeline_mode<synchronous>, transform_indices = @transform_2, window_bounds = array<i64: 1, 128>}, {pipeline_mode = #tpu.pipeline_mode<synchronous>, transform_indices = @transform_3, window_bounds = array<i64: 128, 128>}, {pipeline_mode = #tpu.pipeline_mode<synchronous>, transform_indices = @transform_4, window_bounds = array<i64: 1, 128>}, {transform_indices = @transform_5, window_bounds = array<i64: 16, 128>}]} {
    %c0_i32 = arith.constant 0 : i32
    %0 = arith.cmpi eq, %arg1, %c0_i32 : i32
    %1 = arith.extui %0 : i1 to i32
    %c0_i32_0 = arith.constant 0 : i32
    %2 = arith.cmpi ne, %1, %c0_i32_0 : i32
    scf.if %2 {
      %cst_16 = arith.constant 0.000000e+00 : f32
      %21 = vector.broadcast %cst_16 : f32 to vector<16x128xf32>
      %c0_17 = arith.constant 0 : index
      %c0_18 = arith.constant 0 : index
      %22 = vector.load %arg8[%c0_17, %c0_18] : memref<16x128xf32, #tpu.memory_space<vmem>>, vector<16x128xf32>
      tpu.vector_store %arg8[%c0_17, %c0_18], %21 {strides = array<i32>} : memref<16x128xf32, #tpu.memory_space<vmem>>, vector<16x128xf32>,
    } else {
    }
    %c0 = arith.constant 0 : index
    %c0_1 = arith.constant 0 : index
    %3 = vector.load %arg2[%c0, %c0_1] : memref<16x32xf32, #tpu.memory_space<vmem>>, vector<16x32xf32>
    %4 = arith.truncf %3 : vector<16x32xf32> to vector<16x32xbf16>
    %c0_2 = arith.constant 0 : index
    %c0_3 = arith.constant 0 : index
    %5 = vector.load %arg3[%c0_2, %c0_3] : memref<32x128xbf16, #tpu.memory_space<vmem>>, vector<32x128xbf16>
    %cst = arith.constant dense<0.000000e+00> : vector<16x128xf32>
    %6 = tpu.matmul %4, %5, %cst {dimension_numbers = #tpu.dot_dimension_numbers<[1], [0], [0], [1], [0, 0, 1, 1], [], []>} : vector<16x32xbf16>, vector<32x128xbf16>, vector<16x128xf32> -> vector<16x128xf32>
    %c0_4 = arith.constant 0 : index
    %c0_5 = arith.constant 0 : index
    %7 = vector.load %arg4[%c0_4, %c0_5] : memref<1x128xf32, #tpu.memory_space<vmem>>, vector<1x128xf32>
    %8 = vector.broadcast %7 : vector<1x128xf32> to vector<16x128xf32>
    %9 = arith.addf %6, %8 : vector<16x128xf32>
    %cst_6 = arith.constant 0.000000e+00 : f32
    %10 = vector.broadcast %cst_6 : f32 to vector<16x128xf32>
    %11 = arith.maximumf %9, %10 : vector<16x128xf32>
    %c0_7 = arith.constant 0 : index
    %c0_8 = arith.constant 0 : index
    %12 = vector.load %arg8[%c0_7, %c0_8] : memref<16x128xf32, #tpu.memory_space<vmem>>, vector<16x128xf32>
    %13 = arith.truncf %11 : vector<16x128xf32> to vector<16x128xbf16>
    %c0_9 = arith.constant 0 : index
    %c0_10 = arith.constant 0 : index
    %14 = vector.load %arg5[%c0_9, %c0_10] : memref<128x128xbf16, #tpu.memory_space<vmem>>, vector<128x128xbf16>
    %cst_11 = arith.constant dense<0.000000e+00> : vector<16x128xf32>
    %15 = tpu.matmul %13, %14, %cst_11 {dimension_numbers = #tpu.dot_dimension_numbers<[1], [0], [0], [1], [0, 0, 1, 1], [], []>} : vector<16x128xbf16>, vector<128x128xbf16>, vector<16x128xf32> -> vector<16x128xf32>
    %16 = arith.addf %12, %15 : vector<16x128xf32>
    %c0_12 = arith.constant 0 : index
    %c0_13 = arith.constant 0 : index
    %17 = vector.load %arg8[%c0_12, %c0_13] : memref<16x128xf32, #tpu.memory_space<vmem>>, vector<16x128xf32>
    tpu.vector_store %arg8[%c0_12, %c0_13], %16 {strides = array<i32>} : memref<16x128xf32, #tpu.memory_space<vmem>>, vector<16x128xf32>,
    %c0_i32_14 = arith.constant 0 : i32
    %18 = arith.cmpi eq, %arg1, %c0_i32_14 : i32
    %19 = arith.extui %18 : i1 to i32
    %c0_i32_15 = arith.constant 0 : i32
    %20 = arith.cmpi ne, %19, %c0_i32_15 : i32
    scf.if %20 {
      %c0_16 = arith.constant 0 : index
      %c0_17 = arith.constant 0 : index
      %21 = vector.load %arg8[%c0_16, %c0_17] : memref<16x128xf32, #tpu.memory_space<vmem>>, vector<16x128xf32>
      %c0_18 = arith.constant 0 : index
      %c0_19 = arith.constant 0 : index
      %22 = vector.load %arg6[%c0_18, %c0_19] : memref<1x128xf32, #tpu.memory_space<vmem>>, vector<1x128xf32>
      %23 = vector.broadcast %22 : vector<1x128xf32> to vector<16x128xf32>
      %24 = arith.addf %21, %23 : vector<16x128xf32>
      %c0_20 = arith.constant 0 : index
      %c0_21 = arith.constant 0 : index
      %25 = vector.load %arg7[%c0_20, %c0_21] : memref<16x128xf32, #tpu.memory_space<vmem>>, vector<16x128xf32>
      tpu.vector_store %arg7[%c0_20, %c0_21], %24 {strides = array<i32>} : memref<16x128xf32, #tpu.memory_space<vmem>>, vector<16x128xf32>,
    } else {
    }
    return
  }
  func.func @transform_0(%arg0: i32, %arg1: i32) -> (i32, i32) {
    %c0_i32 = arith.constant 0 : i32
    %c0_i32_0 = arith.constant 0 : i32
    return %arg0, %c0_i32 : i32, i32
  }
  func.func @transform_1(%arg0: i32, %arg1: i32) -> (i32, i32) {
    %c0_i32 = arith.constant 0 : i32
    %c0_i32_0 = arith.constant 0 : i32
    return %c0_i32, %arg1 : i32, i32
  }
  func.func @transform_2(%arg0: i32, %arg1: i32) -> (i32, i32) {
    %c0_i32 = arith.constant 0 : i32
    %c0_i32_0 = arith.constant 0 : i32
    return %c0_i32, %arg1 : i32, i32
  }
  func.func @transform_3(%arg0: i32, %arg1: i32) -> (i32, i32) {
    %c0_i32 = arith.constant 0 : i32
    %c0_i32_0 = arith.constant 0 : i32
    return %arg1, %c0_i32 : i32, i32
  }
  func.func @transform_4(%arg0: i32, %arg1: i32) -> (i32, i32) {
    %c0_i32 = arith.constant 0 : i32
    %c0_i32_0 = arith.constant 0 : i32
    %c0_i32_1 = arith.constant 0 : i32
    return %c0_i32, %c0_i32_0 : i32, i32
  }
  func.func @transform_5(%arg0: i32, %arg1: i32) -> (i32, i32) {
    %c0_i32 = arith.constant 0 : i32
    %c0_i32_0 = arith.constant 0 : i32
    return %arg0, %c0_i32 : i32, i32
  }
}

</mosaic_0001>

<bundles_post_ra>
// kernel: tpu_custom_call.1
= control target key start
LH: loop header
LB: loop body
LE: loop exit
PB: predicated region body
PF: predicated region fallthrough
CT: control target
= control target key end

     0   :  { %10 = vsyncpa [#allocation4], 0  ;;  %s511_s0 = inlined_call_operand.hbm [shape: f32[16,32], index: 0, kind: input, shape index: {}]   ;;  %s512_s1 = inlined_call_operand.hbm [shape: bf16[32,128], index: 1, kind: input, shape index: {}]   ;;  %s513_s2 = inlined_call_operand.vmem [shape: f32[1,128], index: 2, kind: input, shape index: {}]   ;;  %s514_s3 = inlined_call_operand.hbm [shape: bf16[128,128], index: 3, kind: input, shape index: {}]   ;;  %s515_s4 = inlined_call_operand.vmem [shape: f32[1,128], index: 4, kind: input, shape index: {}]   ;;  %s516_s5 = inlined_call_operand.hbm [shape: f32[16,128], index: 5, kind: output, shape index: {}]  }
   0x1   :  { %11 = vsyncpa [#allocation7], 0 }
   0x2   :  { %12 = vsyncpa [#allocation5], 0  ;;  %s447_s18 = smov [#allocation6]  }
   0x3   :  { %s30_s19 = sshll.u32 %s447_s18, 4  ;;  %s31_s19 = int_to_ptr.vmem [resolvable:$true] %s30_s19 }
   0x4   :  { %s369_s20 = scalar_lea.vmem %s31_s19, 256  ;;  %p374_p1 = scmp.lt.s32.totalorder %s31_s19, %s31_s19 }
   0x5   :  { %p370_p0 = scmp.ne.s32.totalorder %s31_s19, %s369_s20  ;;  %p375_p2 = scmp.lt.s32.totalorder %s369_s20, %s369_s20 }
   0x7   :  { %p376_p3 = por %p375_p2, %p374_p1 }
   0x9   :  { %p377_p4 = pnand %p376_p3, %p370_p0 }
   0xb   :  { %380 = shalt.err (!%p377_p4)
}
   0xc   :  { %s448_s21 = smov 64   ;;  %s449_s22 = smov 4  }
   0xd   :  { %36 = dma.hbm_to_vmem [thread:$0]  %s512_s1, 256, %s31_s19, [#allocation7], %s448_s21, %s448_s21, %s449_s22  }
   0xe   :  { %s450_s25 = smov [#allocation3]  }
   0xf   :  { %s18_s26 = sshll.u32 %s450_s25, 4  ;;  %s19_s26 = int_to_ptr.vmem [resolvable:$true] %s18_s26 }
  0x10   :  { %s389_s27 = scalar_lea.vmem %s19_s26, 256  ;;  %p394_p6 = scmp.lt.s32.totalorder %s19_s26, %s19_s26 }
  0x11   :  { %p390_p5 = scmp.ne.s32.totalorder %s19_s26, %s389_s27  ;;  %p395_p7 = scmp.lt.s32.totalorder %s389_s27, %s389_s27 }
  0x13   :  { %p396_p8 = por %p395_p7, %p394_p6 }
  0x15   :  { %p397_p9 = pnand %p396_p8, %p390_p5 }
  0x17   :  { %400 = shalt.err (!%p397_p9)
}
  0x18   :  { %s451_s28 = smov 128   ;;  %s452_s29 = smov 8  }
  0x19   :  { %24 = dma.hbm_to_vmem [thread:$0]  %s511_s0, 256, %s19_s26, [#allocation4], %s451_s28, %s451_s28, %s452_s29  }
  0x1a   :  { %s453_s1 = smov [#allocation8]  }
  0x1b   :  { %s44_s7 = sshll.u32 %s453_s1, 4  ;;  %s45_s7 = int_to_ptr.vmem [resolvable:$true] %s44_s7 }
  0x1c   :  { %s409_s8 = scalar_lea.vmem %s45_s7, 1024  ;;  %p414_p11 = scmp.lt.s32.totalorder %s45_s7, %s45_s7 }
  0x1d   :  { %p410_p10 = scmp.ne.s32.totalorder %s45_s7, %s409_s8  ;;  %p415_p12 = scmp.lt.s32.totalorder %s409_s8, %s409_s8 }
  0x1f   :  { %p416_p13 = por %p415_p12, %p414_p11 }
  0x21   :  { %p417_p0 = pnand %p416_p13, %p410_p10 }
  0x23   :  { %420 = shalt.err (!%p417_p0)
}
  0x24   :  { %50 = dma.hbm_to_vmem [thread:$0]  %s514_s3, 1024, %s45_s7, [#allocation7], %s448_s21, %s448_s21, %s449_s22  }
  0x25   :  { %441 = dma.done.wait [#allocation4], 256  }
  0x26   :  { %442 = vsyncadd [#allocation4], 4294967040 }
  0x27   :  { %443 = dma.done.wait [#allocation7], 1280  }
  0x28   :  { %444 = vsyncadd [#allocation7], 4294966016  ;;  %v454_v0 = vmov 0.0   ;;  %vm455_vm0 = vmmov 0   ;;  %v351_v1 = vld [vmem:[#allocation6 + $0x8] sm:$0xff]   ;;  %v352_v2 = vld [vmem:[#allocation6] sm:$0xff]  }
  0x29   :  { %313 = vmatprep.subr.bf16.mxu0 %v454_v0  ;;  %317 = vmatprep.mubr.msk.bf16.mxu0 %vm455_vm0, %v454_v0  ;;  %v69_v3 = vld [vmem:[#allocation3] sm:$0xff]  ;;  %v70_v4 = vld [vmem:[#allocation3 + $0x8] sm:$0xff]  ;;  %v353_v5 = vld [vmem:[#allocation8 + $0x38] sm:$0xff]   ;;  %vm95_vm1 = vcmask 261120   ;;  %s456_s13 = smov [#allocation9]  }
  0x2a   :  { %321 = vmatprep.subr.bf16.mxu1 %v454_v0  ;;  %337 = vmatprep.mubr.msk.bf16.mxu1 %vm455_vm0, %v454_v0  ;;  %v71_v6 = vpack.c.bf16 %v70_v4, %v69_v3  ;;  %v354_v7 = vld [vmem:[#allocation8 + $0x30] sm:$0xff]   ;;  %v355_v8 = vld [vmem:[#allocation8 + $0x28] sm:$0xff]   ;;  %v356_v9 = vld [vmem:[#allocation8 + $0x20] sm:$0xff]   ;;  %s275_s14 = sshll.u32 %s456_s13, 4  ;;  %s276_s14 = int_to_ptr.vmem [resolvable:$true] %s275_s14 }
  0x2b   :  { %314 = vmatpush3.bf16.msra.mxu0 %v351_v1  ;;  %322 = vmatpush3.bf16.msra.mxu1 %v353_v5  ;;  %v357_v10 = vld [vmem:[#allocation8 + $0x18] sm:$0xff]   ;;  %v358_v11 = vld [vmem:[#allocation8 + $0x10] sm:$0xff]   ;;  %v359_v12 = vld [vmem:[#allocation8 + $0x8] sm:$0xff]   ;;  %p426_p2 = scmp.lt.s32.totalorder %s276_s14, %s276_s14 }
  0x2c   :  { %315 = vmatprep.subr.bf16.mxu0 %v454_v0  ;;  %323 = vmatprep.subr.bf16.mxu1 %v454_v0  ;;  %v360_v13 = vld [vmem:[#allocation8] sm:$0xff]  }
  0x2d   :  { %v288_v14 = vld [vmem:[%s513_s2] ss:$0 sm:$0xff]  ;;  %s421_s2 = scalar_lea.vmem %s276_s14, 256 }
  0x2e   :  { %v300_v24 = vld [vmem:[%s515_s4] ss:$0 sm:$0xff]  ;;  %p422_p1 = scmp.ne.s32.totalorder %s276_s14, %s421_s2  ;;  %p427_p3 = scmp.lt.s32.totalorder %s421_s2, %s421_s2 }
  0x2f   :  { %316 = vmatpush3.bf16.msra.mxu0 %v352_v2  ;;  %324 = vmatpush3.bf16.msra.mxu1 %v354_v7 }
  0x30   :  { %325 = vmatprep.subr.bf16.mxu1 %v454_v0  ;;  %p428_p4 = por %p427_p3, %p426_p2 }
  0x32   :  { %318 = vmatmul.mubr.msk.bf16.vlgmr.msra.gmra.mxu0 %vm95_vm1, %v71_v6  ;;  %p429_p5 = pnand %p428_p4, %p422_p1 }
  0x33   :  { %326 = vmatpush3.bf16.msra.mxu1 %v355_v8 }
  0x34   :  { %327 = vmatprep.subr.bf16.mxu1 %v454_v0 }
  0x37   :  { %328 = vmatpush3.bf16.msra.mxu1 %v356_v9 }
  0x38   :  { %329 = vmatprep.subr.bf16.mxu1 %v454_v0 }
  0x3b   :  { %330 = vmatpush3.bf16.msra.mxu1 %v357_v10 }
  0x3c   :  { %331 = vmatprep.subr.bf16.mxu1 %v454_v0 }
  0x3f   :  { %332 = vmatpush3.bf16.msra.mxu1 %v358_v11 }
  0x40   :  { %333 = vmatprep.subr.bf16.mxu1 %v454_v0 }
  0x43   :  { %334 = vmatpush3.bf16.msra.mxu1 %v359_v12 }
  0x44   :  { %335 = vmatprep.subr.bf16.mxu1 %v454_v0 }
  0x47   :  { %336 = vmatpush3.bf16.msra.mxu1 %v360_v13 }
  0xf2   :  { %v133_v15 = vpop.f32.mrf.mxu0 }
  0xf3   :  { %v134_v17 = vadd.f32 %v288_v14, %v133_v15 }
  0xf4   :  { %v319_v16 = vpop.f32.mrf.mxu0 }
  0xf5   :  { %v140_v21 = vmax.f32 %v134_v17, 0.0 }
  0xf6   :  { %v136_v18 = vpop.f32.mrf.mxu0 }
  0xf7   :  { %v137_v19 = vadd.f32 %v288_v14, %v136_v18 }
  0xf8   :  { %v320_v20 = vpop.f32.mrf.mxu0 }
  0xf9   :  { %v141_v22 = vmax.f32 %v137_v19, 0.0 }
  0xfb   :  { %v144_v23 = vpack.c.bf16 %v141_v22, %v140_v21 }
  0xfd   :  { %338 = vmatmul.mubr.bf16.vlgmr.msra.gmra.mxu1 %v144_v23 }
 0x1bd   :  { %v243_v25 = vpop.f32.mrf.mxu1 }
 0x1be   :  { %v266_v26 = vadd.f32 %v300_v24, %v243_v25 }
 0x1bf   :  { %v339_v27 = vpop.f32.mrf.mxu1 }
 0x1c0   :  { %268 = vst [vmem:[#allocation9] sm:$0xff] %v266_v26 }
 0x1c1   :  { %v246_v28 = vpop.f32.mrf.mxu1 }
 0x1c2   :  { %v267_v29 = vadd.f32 %v300_v24, %v246_v28 }
 0x1c3   :  { %v340_v30 = vpop.f32.mrf.mxu1 }
 0x1c4   :  { %269 = vst [vmem:[#allocation9 + $0x8] sm:$0xff] %v267_v29 }
 0x1c5   :  { %432 = shalt.err (!%p429_p5)
}
 0x1c6   :  { %281 = dma.vmem_to_hbm [thread:$0]  %s276_s14, 256, %s516_s5, [#allocation5], %s451_s28, %s451_s28, %s452_s29  }
 0x1c7   :  { %445 = dma.done.wait [#allocation5], 256  }
 0x1c8   :  { %446 = vsyncadd [#allocation5], 4294967040 }
 0x1c9   :  { %285 = vsyncpa [#allocation4], 1 }
 0x1ca   :  { %286 = vsyncpa [#allocation7], 1 }
 0x1cb   :  { %287 = vsyncpa [#allocation5], 1 }

</bundles_post_ra>
